<compile_context>
chip_gen: v7x
topology: tpu7x:2x2x1
jax: 0.10.0
libtpu: 0.0.40
codegen_flags: <defaults>
</compile_context>

<pallas_src>
import functools

import jax
import jax.numpy as jnp
from jax.experimental import pallas as pl
from jax.experimental.pallas import tpu as pltpu


def _choose_tile_k(k_per_f, tile_k_max):
    """Largest divisor of k_per_f that is a multiple of 128 and <= tile_k_max."""
    cap = min(k_per_f, tile_k_max)
    best = 0
    t = 128
    while t <= cap:
        if k_per_f % t == 0:
            best = t
        t += 128
    if best:
        return best
    # TODO(synk): tiny / non-128-aligned feature segments: fall back to one tile per
    # feature segment (masked last-dim stores -- correct but slower).
    if k_per_f <= tile_k_max:
        return k_per_f
    return max(d for d in range(1, cap + 1) if k_per_f % d == 0)


def _mbstd_kernel(x_ref, out_ref, acc_ref, *, G, M, F, HW, KT, KPF, inv_denom):
    """x_ref/out_ref: (N, TK) column tiles of the flattened views; acc_ref: (F, M, 1)."""
    N, TK = x_ref.shape
    kt = pl.program_id(0)

    @pl.when(kt == 0)
    def _init():
        acc_ref[...] = jnp.zeros_like(acc_ref)

    @pl.when(kt < KT)
    def _passthrough_and_accumulate():
        # Streamed pass-through copy in the input dtype (no f32 upcast on the copy path).
        out_ref[...] = x_ref[...]

        # Group member of sub-batch m is row b = g*M + m.  Two-pass mean/variance;
        # row slices are re-read from VMEM (vld is cheap) rather than cached.
        inv_G = 1.0 / G
        gsum = x_ref[0:M, :].astype(jnp.float32)
        for g in range(1, G):
            gsum = gsum + x_ref[g * M:(g + 1) * M, :].astype(jnp.float32)
        mean = gsum * inv_G                                    # (M, TK)

        var = jnp.zeros((M, TK), jnp.float32)
        for g in range(G):
            d = x_ref[g * M:(g + 1) * M, :].astype(jnp.float32) - mean
            var = var + d * d
        std = jnp.sqrt(var * inv_G + 1e-8)                     # (M, TK)

        # This tile lies entirely inside one feature segment f = kt // KPF.
        partial = jnp.sum(std, axis=1, keepdims=True)          # (M, 1)
        if F == 1:
            acc_ref[0] = acc_ref[0] + partial
        else:
            f_dyn = kt // KPF
            for f in range(F):
                @pl.when(f_dyn == f)
                def _acc(f=f):
                    acc_ref[f] = acc_ref[f] + partial

    @pl.when(kt >= KT)
    def _write_stat_channels():
        # Epilogue: broadcast stat[m, f] into the F new channels (columns [K, K+F*HW)).
        stats = acc_ref[...]                                   # (F, M, 1) f32, tiny

        # Row-selection masks built with equality compares only (no captured constant
        # tables, no vector int div/rem): row b belongs to sub-batch m iff b % M == m,
        # i.e. b in {m, M+m, ..., (G-1)*M+m}.
        rows = jax.lax.broadcasted_iota(jnp.int32, (N, 1), 0)
        row_sel = []
        for m in range(M):
            s_m = rows == m
            for g in range(1, G):
                s_m = jnp.logical_or(s_m, rows == g * M + m)
            row_sel.append(s_m)

        if F > 1:
            # Global column index within the stat region for this tile.
            col = jax.lax.broadcasted_iota(jnp.int32, (1, TK), 1) + (kt - KT) * TK

        val = jnp.zeros((N, TK), jnp.float32)
        for f in range(F):
            if F > 1:
                fsel = jnp.logical_and(col >= f * HW, col < (f + 1) * HW)
            for m in range(M):
                stat_fm = stats[f:f + 1, m:m + 1, 0] * inv_denom     # (1, 1)
                sel = row_sel[m]
                if F > 1:
                    sel = jnp.logical_and(sel, fsel)
                val = jnp.where(sel, stat_fm, val)
        # Columns beyond the real output width are boundary-masked by Pallas.
        out_ref[...] = val.astype(out_ref.dtype)


def minibatch_stddev_layer(x, group_size=4, num_new_features=1, *, tile_k_max=2048):
    n, c, h, w = x.shape
    G = min(n, group_size)
    assert n % G == 0, "batch must be divisible by group size"
    F = num_new_features
    assert c % F == 0, "channels must be divisible by num_new_features"
    M = n // G
    HW = h * w
    K = c * HW                       # flattened pass-through width per row
    FHW = F * HW                     # flattened stat width per row
    Ktot = K + FHW
    K_per_f = K // F                 # (C//F) * H * W

    TK = _choose_tile_k(K_per_f, tile_k_max)
    KT = K // TK                     # pass-through tiles
    KPF = K_per_f // TK              # pass-through tiles per feature segment
    KS = pl.cdiv(FHW, TK)            # stat-region tiles (usually 1)

    x2 = x.reshape(n, K)             # lane-dense 2-D view (free, row-major)

    kernel = functools.partial(
        _mbstd_kernel, G=G, M=M, F=F, HW=HW, KT=KT, KPF=KPF,
        inv_denom=1.0 / ((c // F) * HW))

    out2 = pl.pallas_call(
        kernel,
        out_shape=jax.ShapeDtypeStruct((n, Ktot), x.dtype),
        grid=(KT + KS,),
        in_specs=[pl.BlockSpec((n, TK), lambda kt: (0, jnp.minimum(kt, KT - 1)))],
        out_specs=pl.BlockSpec((n, TK), lambda kt: (0, kt)),
        scratch_shapes=[pltpu.VMEM((F, M, 1), jnp.float32)],
        compiler_params=pltpu.CompilerParams(dimension_semantics=("arbitrary",)),
    )(x2)
    return out2.reshape(n, c + F, h, w)


def _reference(x, group_size=4, num_new_features=1):
    """Pure-JAX transcription of the PyTorch forward (for verification)."""
    n, c, h, w = x.shape
    G = min(n, group_size)
    F = num_new_features
    y = x.reshape(G, -1, F, c // F, h, w)
    y = y - jnp.mean(y, axis=0, keepdims=True)
    y = jnp.mean(y ** 2, axis=0)
    y = jnp.sqrt(y + 1e-8)
    y = jnp.mean(y, axis=(2, 3, 4), keepdims=True)   # (M, F, 1, 1, 1)
    y = jnp.mean(y, axis=2)                          # (M, F, 1, 1)
    y = jnp.tile(y, (G, 1, h, w))                    # (N, F, H, W)
    return jnp.concatenate([x, y], axis=1)


if __name__ == "__main__":
    key = jax.random.PRNGKey(0)

    # Primary config: N=8, C=4, 16x16, group_size=4 -> G=4, M=2 sub-batches.
    x = jax.random.normal(key, (8, 4, 16, 16), dtype=jnp.float32)
    out = jax.block_until_ready(minibatch_stddev_layer(x, group_size=4, num_new_features=1))
    ref = _reference(x, group_size=4, num_new_features=1)
    assert out.shape == (8, 5, 16, 16), out.shape
    assert jnp.allclose(out, ref, atol=1e-5, rtol=1e-5), "mismatch vs reference"

    # Same input, smaller tiles -> exercises multi-tile accumulation across grid steps.
    out_small = jax.block_until_ready(
        minibatch_stddev_layer(x, group_size=4, num_new_features=1, tile_k_max=256))
    assert jnp.allclose(out_small, ref, atol=1e-5, rtol=1e-5), "mismatch (small tiles)"

    # num_new_features > 1 and M == 1 path: N=4, C=8, 8x8, F=2.
    x2 = jax.random.normal(jax.random.PRNGKey(1), (4, 8, 8, 8), dtype=jnp.float32)
    out2 = jax.block_until_ready(minibatch_stddev_layer(x2, group_size=4, num_new_features=2))
    ref2 = _reference(x2, group_size=4, num_new_features=2)
    assert out2.shape == (4, 10, 8, 8), out2.shape
    assert jnp.allclose(out2, ref2, atol=1e-5, rtol=1e-5), "mismatch vs reference (F=2)"

    print("KERNEL_OK")
</pallas_src>

<mosaic_0001>
module attributes {stable_mosaic.version = 11 : i64} {
  func.func @_mbstd_kernel(%arg0: i32, %arg1: memref<8x1024xf32, #tpu.memory_space<vmem>>, %arg2: memref<8x1024xf32, #tpu.memory_space<vmem>>, %arg3: memref<1x2x1xf32, #tpu.memory_space<vmem>>) attributes {dimension_semantics = [#tpu.dimension_semantics<arbitrary>], iteration_bounds = array<i64: 2>, scalar_prefetch = 0 : i64, scratch_operands = 1 : i64, tpu.core_type = #tpu.core_type<tc>, window_params = [{transform_indices = @transform_0, window_bounds = array<i64: 8, 1024>}, {transform_indices = @transform_1, window_bounds = array<i64: 8, 1024>}]} {
    %c0_i32 = arith.constant 0 : i32
    %0 = arith.cmpi eq, %arg0, %c0_i32 : i32
    %1 = arith.extui %0 : i1 to i32
    %c0_i32_0 = arith.constant 0 : i32
    %2 = arith.cmpi ne, %1, %c0_i32_0 : i32
    scf.if %2 {
      %cst = arith.constant 0.000000e+00 : f32
      %9 = vector.broadcast %cst : f32 to vector<1x2x1xf32>
      %c0 = arith.constant 0 : index
      %c0_4 = arith.constant 0 : index
      %c0_5 = arith.constant 0 : index
      %10 = vector.load %arg3[%c0, %c0_4, %c0_5] : memref<1x2x1xf32, #tpu.memory_space<vmem>>, vector<1x2x1xf32>
      tpu.vector_store %arg3[%c0, %c0_4, %c0_5], %9 {strides = array<i32>} : memref<1x2x1xf32, #tpu.memory_space<vmem>>, vector<1x2x1xf32>,
    } else {
    }
    %c1_i32 = arith.constant 1 : i32
    %3 = arith.cmpi slt, %arg0, %c1_i32 : i32
    %4 = arith.extui %3 : i1 to i32
    %c0_i32_1 = arith.constant 0 : i32
    %5 = arith.cmpi ne, %4, %c0_i32_1 : i32
    scf.if %5 {
      %c0 = arith.constant 0 : index
      %c0_4 = arith.constant 0 : index
      %9 = vector.load %arg1[%c0, %c0_4] : memref<8x1024xf32, #tpu.memory_space<vmem>>, vector<8x1024xf32>
      %c0_5 = arith.constant 0 : index
      %c0_6 = arith.constant 0 : index
      %10 = vector.load %arg2[%c0_5, %c0_6] : memref<8x1024xf32, #tpu.memory_space<vmem>>, vector<8x1024xf32>
      tpu.vector_store %arg2[%c0_5, %c0_6], %9 {strides = array<i32>} : memref<8x1024xf32, #tpu.memory_space<vmem>>, vector<8x1024xf32>,
      %c0_7 = arith.constant 0 : index
      %c0_8 = arith.constant 0 : index
      %11 = vector.load %arg1[%c0_7, %c0_8] : memref<8x1024xf32, #tpu.memory_space<vmem>>, vector<2x1024xf32>
      %c2 = arith.constant 2 : index
      %c0_9 = arith.constant 0 : index
      %12 = vector.load %arg1[%c2, %c0_9] : memref<8x1024xf32, #tpu.memory_space<vmem>>, vector<2x1024xf32>
      %13 = arith.addf %11, %12 : vector<2x1024xf32>
      %c4 = arith.constant 4 : index
      %c0_10 = arith.constant 0 : index
      %14 = vector.load %arg1[%c4, %c0_10] : memref<8x1024xf32, #tpu.memory_space<vmem>>, vector<2x1024xf32>
      %15 = arith.addf %13, %14 : vector<2x1024xf32>
      %c6 = arith.constant 6 : index
      %c0_11 = arith.constant 0 : index
      %16 = vector.load %arg1[%c6, %c0_11] : memref<8x1024xf32, #tpu.memory_space<vmem>>, vector<2x1024xf32>
      %17 = arith.addf %15, %16 : vector<2x1024xf32>
      %cst = arith.constant 2.500000e-01 : f32
      %18 = vector.broadcast %cst : f32 to vector<2x1024xf32>
      %19 = arith.mulf %17, %18 : vector<2x1024xf32>
      %cst_12 = arith.constant 0.000000e+00 : f32
      %20 = vector.broadcast %cst_12 : f32 to vector<2x1024xf32>
      %c0_13 = arith.constant 0 : index
      %c0_14 = arith.constant 0 : index
      %21 = vector.load %arg1[%c0_13, %c0_14] : memref<8x1024xf32, #tpu.memory_space<vmem>>, vector<2x1024xf32>
      %22 = arith.subf %21, %19 : vector<2x1024xf32>
      %23 = arith.mulf %22, %22 : vector<2x1024xf32>
      %24 = arith.addf %20, %23 : vector<2x1024xf32>
      %c2_15 = arith.constant 2 : index
      %c0_16 = arith.constant 0 : index
      %25 = vector.load %arg1[%c2_15, %c0_16] : memref<8x1024xf32, #tpu.memory_space<vmem>>, vector<2x1024xf32>
      %26 = arith.subf %25, %19 : vector<2x1024xf32>
      %27 = arith.mulf %26, %26 : vector<2x1024xf32>
      %28 = arith.addf %24, %27 : vector<2x1024xf32>
      %c4_17 = arith.constant 4 : index
      %c0_18 = arith.constant 0 : index
      %29 = vector.load %arg1[%c4_17, %c0_18] : memref<8x1024xf32, #tpu.memory_space<vmem>>, vector<2x1024xf32>
      %30 = arith.subf %29, %19 : vector<2x1024xf32>
      %31 = arith.mulf %30, %30 : vector<2x1024xf32>
      %32 = arith.addf %28, %31 : vector<2x1024xf32>
      %c6_19 = arith.constant 6 : index
      %c0_20 = arith.constant 0 : index
      %33 = vector.load %arg1[%c6_19, %c0_20] : memref<8x1024xf32, #tpu.memory_space<vmem>>, vector<2x1024xf32>
      %34 = arith.subf %33, %19 : vector<2x1024xf32>
      %35 = arith.mulf %34, %34 : vector<2x1024xf32>
      %36 = arith.addf %32, %35 : vector<2x1024xf32>
      %cst_21 = arith.constant 2.500000e-01 : f32
      %37 = vector.broadcast %cst_21 : f32 to vector<2x1024xf32>
      %38 = arith.mulf %36, %37 : vector<2x1024xf32>
      %cst_22 = arith.constant 9.99999993E-9 : f32
      %39 = vector.broadcast %cst_22 : f32 to vector<2x1024xf32>
      %40 = arith.addf %38, %39 : vector<2x1024xf32>
      %41 = math.sqrt %40 : vector<2x1024xf32>
      %cst_23 = arith.constant dense<0.000000e+00> : vector<2xf32>
      %42 = vector.multi_reduction <add>, %41, %cst_23 [1] : vector<2x1024xf32> to vector<2xf32>
      %43 = vector.shape_cast %42 : vector<2xf32> to vector<2x1xf32>
      %c0_24 = arith.constant 0 : index
      %c0_25 = arith.constant 0 : index
      %c0_26 = arith.constant 0 : index
      %44 = vector.load %arg3[%c0_24, %c0_25, %c0_26] : memref<1x2x1xf32, #tpu.memory_space<vmem>>, vector<1x2x1xf32>
      %45 = vector.shape_cast %44 : vector<1x2x1xf32> to vector<2x1xf32>
      %46 = arith.addf %45, %43 : vector<2x1xf32>
      %c0_27 = arith.constant 0 : index
      %c0_28 = arith.constant 0 : index
      %c0_29 = arith.constant 0 : index
      %47 = vector.load %arg3[%c0_27, %c0_28, %c0_29] : memref<1x2x1xf32, #tpu.memory_space<vmem>>, vector<1x2x1xf32>
      %48 = vector.shape_cast %47 : vector<1x2x1xf32> to vector<2x1xf32>
      %49 = vector.shape_cast %46 : vector<2x1xf32> to vector<1x2x1xf32>
      tpu.vector_store %arg3[%c0_27, %c0_28, %c0_29], %49 {strides = array<i32>} : memref<1x2x1xf32, #tpu.memory_space<vmem>>, vector<1x2x1xf32>,
    } else {
    }
    %c1_i32_2 = arith.constant 1 : i32
    %6 = arith.cmpi sge, %arg0, %c1_i32_2 : i32
    %7 = arith.extui %6 : i1 to i32
    %c0_i32_3 = arith.constant 0 : i32
    %8 = arith.cmpi ne, %7, %c0_i32_3 : i32
    scf.if %8 {
      %c0 = arith.constant 0 : index
      %c0_4 = arith.constant 0 : index
      %c0_5 = arith.constant 0 : index
      %9 = vector.load %arg3[%c0, %c0_4, %c0_5] : memref<1x2x1xf32, #tpu.memory_space<vmem>>, vector<1x2x1xf32>
      %10 = tpu.iota {dimensions = array<i32: 0>} : vector<8x1xi32>
      %c0_i32_6 = arith.constant 0 : i32
      %11 = vector.broadcast %c0_i32_6 : i32 to vector<8x1xi32>
      %12 = arith.cmpi eq, %10, %11 : vector<8x1xi32>
      %c2_i32 = arith.constant 2 : i32
      %13 = vector.broadcast %c2_i32 : i32 to vector<8x1xi32>
      %14 = arith.cmpi eq, %10, %13 : vector<8x1xi32>
      %15 = arith.ori %12, %14 : vector<8x1xi1>
      %c4_i32 = arith.constant 4 : i32
      %16 = vector.broadcast %c4_i32 : i32 to vector<8x1xi32>
      %17 = arith.cmpi eq, %10, %16 : vector<8x1xi32>
      %18 = arith.ori %15, %17 : vector<8x1xi1>
      %c6_i32 = arith.constant 6 : i32
      %19 = vector.broadcast %c6_i32 : i32 to vector<8x1xi32>
      %20 = arith.cmpi eq, %10, %19 : vector<8x1xi32>
      %21 = arith.ori %18, %20 : vector<8x1xi1>
      %c1_i32_7 = arith.constant 1 : i32
      %22 = vector.broadcast %c1_i32_7 : i32 to vector<8x1xi32>
      %23 = arith.cmpi eq, %10, %22 : vector<8x1xi32>
      %c3_i32 = arith.constant 3 : i32
      %24 = vector.broadcast %c3_i32 : i32 to vector<8x1xi32>
      %25 = arith.cmpi eq, %10, %24 : vector<8x1xi32>
      %26 = arith.ori %23, %25 : vector<8x1xi1>
      %c5_i32 = arith.constant 5 : i32
      %27 = vector.broadcast %c5_i32 : i32 to vector<8x1xi32>
      %28 = arith.cmpi eq, %10, %27 : vector<8x1xi32>
      %29 = arith.ori %26, %28 : vector<8x1xi1>
      %c7_i32 = arith.constant 7 : i32
      %30 = vector.broadcast %c7_i32 : i32 to vector<8x1xi32>
      %31 = arith.cmpi eq, %10, %30 : vector<8x1xi32>
      %32 = arith.ori %29, %31 : vector<8x1xi1>
      %cst = arith.constant 0.000000e+00 : f32
      %33 = vector.broadcast %cst : f32 to vector<8x1024xf32>
      %34 = vector.extract_strided_slice %9 {offsets = [0, 0, 0], sizes = [1, 1, 1], strides = [1, 1, 1]} : vector<1x2x1xf32> to vector<1x1x1xf32>
      %35 = vector.shape_cast %34 : vector<1x1x1xf32> to vector<1x1xf32>
      %cst_8 = arith.constant 9.765625E-4 : f32
      %36 = vector.broadcast %cst_8 : f32 to vector<1x1xf32>
      %37 = arith.mulf %35, %36 : vector<1x1xf32>
      %38 = vector.shape_cast %21 : vector<8x1xi1> to vector<8x1xi1>
      %39 = vector.broadcast %38 : vector<8x1xi1> to vector<8x1024xi1>
      %40 = vector.shape_cast %37 : vector<1x1xf32> to vector<1x1xf32>
      %41 = vector.broadcast %40 : vector<1x1xf32> to vector<8x1024xf32>
      %42 = arith.select %39, %41, %33 : vector<8x1024xi1>, vector<8x1024xf32>
      %43 = vector.extract_strided_slice %9 {offsets = [0, 1, 0], sizes = [1, 1, 1], strides = [1, 1, 1]} : vector<1x2x1xf32> to vector<1x1x1xf32>
      %44 = vector.shape_cast %43 : vector<1x1x1xf32> to vector<1x1xf32>
      %cst_9 = arith.constant 9.765625E-4 : f32
      %45 = vector.broadcast %cst_9 : f32 to vector<1x1xf32>
      %46 = arith.mulf %44, %45 : vector<1x1xf32>
      %47 = vector.shape_cast %32 : vector<8x1xi1> to vector<8x1xi1>
      %48 = vector.broadcast %47 : vector<8x1xi1> to vector<8x1024xi1>
      %49 = vector.shape_cast %46 : vector<1x1xf32> to vector<1x1xf32>
      %50 = vector.broadcast %49 : vector<1x1xf32> to vector<8x1024xf32>
      %51 = arith.select %48, %50, %42 : vector<8x1024xi1>, vector<8x1024xf32>
      %c0_10 = arith.constant 0 : index
      %c0_11 = arith.constant 0 : index
      %52 = vector.load %arg2[%c0_10, %c0_11] : memref<8x1024xf32, #tpu.memory_space<vmem>>, vector<8x1024xf32>
      tpu.vector_store %arg2[%c0_10, %c0_11], %51 {strides = array<i32>} : memref<8x1024xf32, #tpu.memory_space<vmem>>, vector<8x1024xf32>,
    } else {
    }
    return
  }
  func.func @transform_0(%arg0: i32) -> (i32, i32) {
    %c0_i32 = arith.constant 0 : i32
    %0 = arith.minsi %arg0, %c0_i32 : i32
    %c0_i32_0 = arith.constant 0 : i32
    %c0_i32_1 = arith.constant 0 : i32
    return %c0_i32_0, %0 : i32, i32
  }
  func.func @transform_1(%arg0: i32) -> (i32, i32) {
    %c0_i32 = arith.constant 0 : i32
    %c0_i32_0 = arith.constant 0 : i32
    return %c0_i32, %arg0 : i32, i32
  }
}

</mosaic_0001>

<bundles_post_ra>
// kernel: tpu_custom_call.1
= control target key start
LH: loop header
LB: loop body
LE: loop exit
PB: predicated region body
PF: predicated region fallthrough
CT: control target
= control target key end

     0   :  { %6 = vsyncpa [#allocation4], 0  ;;  %s1513_s0 = inlined_call_operand.hbm [shape: f32[8,1024], index: 0, kind: input, shape index: {}]   ;;  %s1514_s1 = inlined_call_operand.hbm [shape: f32[8,1280], index: 1, kind: output, shape index: {}]  }
   0x1   :  { %8 = vsyncpa [#allocation4 + $0x1], 0 }
   0x2   :  { %9 = vsyncpa [#allocation5], 0 }
   0x3   :  { %11 = vsyncpa [#allocation5 + $0x1], 0  ;;  %s1010_s6 = smov 0   ;;  %s1012_s7 = smov 0  }
   0x4   :  { %s1014_s8 = smov 0   ;;  %s1016_s9 = smov 0  }
   0x5   :  { %s1018_s10 = smov 0   ;;  %s1020_s11 = smov 0  }
   0x6   :  { %s1022_s12 = smov 0  }
   0x7 LB: > { %s1044_s13 = sadd.s32 4294967295, %s995_s12   ;;  %s762_s14 = sadd.s32 4294967294, %s995_s12   ;;  %s995_s12 = sphi %s1022_s12, %s1531_s12   ;;  %s991_s11 = sphi %s1020_s11, %s1530_s11   ;;  %s987_s10 = sphi %s1018_s10, %s1529_s10   ;;  %s983_s9 = sphi %s1016_s9, %s1528_s9   ;;  %s979_s8 = sphi %s1014_s8, %s1527_s8   ;;  %s975_s7 = sphi %s1012_s7, %s1526_s7   ;;  %s971_s6 = sphi %s1010_s6, %s1525_s6  }
   0x8   : > { %s1048_s15 = sadd.s32 1, %s995_s12   ;;  %p21_p0 = scmp.lt.s32.totalorder %s995_s12, 0 }
   0x9   : > { %p23_p1 = scmp.lt.s32.totalorder %s1048_s15, 0  ;;  %s28_s16 = sadd.s32 1, %s991_s11 }
   0xa   : > { %s22_s17 = scalar_select %p21_p0, %s995_s12, 0 }
   0xb   : > { %s24_s18 = scalar_select %p23_p1, %s1048_s15, 0 }
   0xc   : > { %p35_p2 = scmp.ne.s32.totalorder %s991_s11, %s987_s10  ;;  %p36_p3 = scmp.eq.s32.totalorder %s995_s12, 0 }
   0xd   : > { %s25_s19 = ssub.s32 %s22_s17, %s24_s18  ;;  %p41_p4 = scmp.ne.s32.totalorder %s987_s10, %s983_s9 }
   0xe   : > { %p26_p5 = scmp.eq.s32.totalorder %s25_s19, 0  ;;  %p1059_p6 = por %p36_p3, %p35_p2 }
   0xf   : > { %p42_p7 = scmp.eq.s32.totalorder %s1044_s13, 0  ;;  %s51_s21 = ssub.s32 %s995_s12, %s1048_s15 }
  0x10   : > { %s1067_s22 = scalar_select %p26_p5, %s991_s11, %s28_s16  }
  0x11   : > { %p1069_p8 = por %p42_p7, %p41_p4  ;;  %p52_p9 = scmp.eq.s32.totalorder %s51_s21, 0 }
  0x12   : > { %s54_s24 = sadd.s32 1, %s979_s8  ;;  %p64_p10 = scmp.ne.s32.totalorder %s979_s8, %s975_s7 }
  0x13   : > { %s1077_s25 = scalar_select %p52_p9, %s979_s8, %s54_s24  }
  0x14   : > { %p65_p11 = scmp.eq.s32.totalorder %s1044_s13, 1  ;;  %p70_p12 = scmp.ne.s32.totalorder %s975_s7, %s971_s6 }
  0x15   : > { %p71_p13 = scmp.eq.s32.totalorder %s762_s14, 1  ;;  %p800_p2 = scmp.lt.s32.totalorder %s995_s12, 2 }
  0x16   : > { %p1083_p1 = por %p65_p11, %p64_p10  ;;  %s91_s28 = sand.u32 1, %s991_s11  }
  0x17   : > { %p1088_p3 = por %p71_p13, %p70_p12  ;;  %s765_s29 = sshll.u32 %s91_s28, 6 }
  0x18   : > { %s1517_s26 = scalar_select %p1083_p1, 1, 0 }
  0x19   : > { %s1518_s27 = scalar_select %p1088_p3, 1, 0 }
  0x1a   : > { %s783_s30 = sshll.u32 %s22_s17, 10  ;;  %s95_s5 = scalar_lea.vmem [#allocation3], %s765_s29 }
  0x1b   : > { %s1096_s4 = scalar_lea.hbm %s1513_s0, %s783_s30  ;;  %s105_s9 = sshll.u32 %s95_s5, 4  ;;  %s1098_s9 = int_to_ptr.vmem [resolvable:$true] %s105_s9 }
  0x1c   : > { %p1102_p4 = pnand %p800_p2, %p1059_p6  ;;  %s92_s16 = scalar_lea.sflag [#allocation4], %s91_s28 }
  0x1d   : > { %s875_s17 = scalar_lea.hbm %s1096_s4, 1024  ;;  %s880_s20 = scalar_lea.hbm %s1513_s0, 1024 }
  0x1e   : > { %p876_p9 = scmp.ne.s32.totalorder %s1096_s4, %s875_s17  ;;  %p877_p10 = pneg %p1102_p4 }
  0x1f   : > { %p881_p6 = scmp.lt.u32.totalorder %s1096_s4, %s1513_s0  ;;  %p882_p13 = scmp.lt.u32.totalorder %s880_s20, %s875_s17 }
  0x20   : > { %p878_p11 = pnand %p877_p10, %p876_p9  ;;  %p884_p0 = scmp.lt.u32.totalorder %s875_s17, %s1096_s4 }
  0x21   : > { %p883_p2 = por %p882_p13, %p881_p6 }
  0x22   : > { %p879_p12 = pneg %p878_p11 }
  0x23   : > { %p885_p5 = por %p884_p0, %p883_p2 }
  0x25   : > { %p886_p7 = pnand %p885_p5, %p879_p12 }
  0x27   : > { %889 = shalt.err (!%p886_p7)
}
  0x28   : > { %s890_s28 = scalar_lea.vmem %s1098_s9, 1024  ;;  %s997_s29 = smov [#allocation3]  }
  0x29   : > { %p891_p9 = scmp.ne.s32.totalorder %s1098_s9, %s890_s28  ;;  %s895_s30 = sshll.u32 %s997_s29, 4  ;;  %s896_s30 = int_to_ptr.vmem [resolvable:$false] %s895_s30 }
  0x2a   : > { %s897_s2 = scalar_lea.vmem %s896_s30, 2048  ;;  %p898_p1 = scmp.lt.s32.totalorder %s1098_s9, %s896_s30 }
  0x2b   : > { %p893_p11 = pnand %p891_p9, %p877_p10  ;;  %p899_p6 = scmp.lt.s32.totalorder %s897_s2, %s890_s28 }
  0x2d   : > { %p894_p3 = pneg %p893_p11  ;;  %p900_p13 = por %p899_p6, %p898_p1 }
  0x2f   : > { %p901_p0 = pnand %p900_p13, %p894_p3 }
  0x31   : > { %904 = shalt.err (!%p901_p0)
}
  0x32   : > { %795 = dma.hbm_to_vmem [thread:$0]  (!%p1102_p4), %s1096_s4, 1024, %s1098_s9, %s92_s16  }
  0x33   : > { %p1520_p5 = scmp.lt.s32.totalorder %s995_s12, 3  ;;  %p1521_p7 = scmp.ge.s32.totalorder %s995_s12, 1 }
  0x35   : > { %p111_p10 = pnand %p1521_p7, %p1520_p5 }
  0x36   : > { %s116_s3 = sand.u32 (!%p111_p10), 1, %s987_s10  }
  0x37   : > { %114 = sbr.rel (%p111_p10) target bundleno = 413 (0x19d), region = 24  ;;  %s769_s5 = sshll.u32 (!%p111_p10), %s116_s3, 6 }
  0x38   : > { %s117_s17 = scalar_lea.sflag (!%p111_p10), [#allocation4], %s116_s3  ;;  %s1138_s18 = scalar_lea.vmem (!%p111_p10), [#allocation3], %s769_s5 }
  0x3e   : > { %962 = dma.done.wait (%p1069_p8), %s117_s17, 1024  }
  0x3f   : > { %964 = vsyncadd (%p1069_p8), %s117_s17, 4294966272  ;;  %s136_s14 = sand.u32 1, %s975_s7   ;;  %p771_p1 = scmp.ne.s32.totalorder %s1044_s13, 0 }
  0x40   : > { %s770_s4 = sshll.u32 %s136_s14, 6  ;;  %vm151_vm0 = vcmask (!%p771_p1), 1024   ;;  %v998_v0 = vmov (!%p771_p1), 0.0  }
  0x41   : > { %s1147_s9 = scalar_lea.vmem [#allocation6], %s770_s4  ;;  %150 = sbr.rel (%p771_p1) target bundleno = 72 (0x48), region = 32  ;;  %152 = vst.msk [vmem:[#allocation2] sm:$0x3] (!%p771_p1), %vm151_vm0, %v998_v0 }
  0x48 PF: > { %p772_p3 = scmp.ge.s32.totalorder %s1044_s13, 1 }
  0x49   : > { %v157_v1 = vld [vmem:[%s1138_s18] sm:$0xff] (!%p772_p3)  ;;  %v158_v2 = vld [vmem:[%s1138_s18 + $0x8] sm:$0xff] (!%p772_p3)  ;;  %v159_v3 = vld [vmem:[%s1138_s18 + $0x10] sm:$0xff] (!%p772_p3)  ;;  %vm605_vm3 = vcmask (!%p772_p3), 1041408  }
  0x4a   : > { %156 = sbr.rel (%p772_p3) target bundleno = 310 (0x136), region = 36  ;;  %v160_v4 = vld [vmem:[%s1138_s18 + $0x18] sm:$0xff] (!%p772_p3)  ;;  %v161_v5 = vld [vmem:[%s1138_s18 + $0x20] sm:$0xff] (!%p772_p3)  ;;  %v162_v6 = vld [vmem:[%s1138_s18 + $0x28] sm:$0xff] (!%p772_p3)  ;;  %165 = vst [vmem:[%s1147_s9] sm:$0xff] (!%p772_p3), %v157_v1 }
  0x4b   : > { %166 = vst [vmem:[%s1147_s9 + $0x8] sm:$0xff] (!%p772_p3), %v158_v2  ;;  %167 = vst [vmem:[%s1147_s9 + $0x10] sm:$0xff] (!%p772_p3), %v159_v3  ;;  %v163_v7 = vld [vmem:[%s1138_s18 + $0x30] sm:$0xff] (!%p772_p3)  ;;  %v164_v8 = vld [vmem:[%s1138_s18 + $0x38] sm:$0xff] (!%p772_p3) }
  0x4c   : > { %168 = vst [vmem:[%s1147_s9 + $0x18] sm:$0xff] (!%p772_p3), %v160_v4  ;;  %169 = vst [vmem:[%s1147_s9 + $0x20] sm:$0xff] (!%p772_p3), %v161_v5  ;;  %v1168_v9 = vld [vmem:[%s1138_s18] sm:$0x3] (!%p772_p3)  ;;  %v1171_v10 = vld [vmem:[%s1138_s18 + $0x8] sm:$0x3] (!%p772_p3) }
  0x4d   : > { %170 = vst [vmem:[%s1147_s9 + $0x28] sm:$0xff] (!%p772_p3), %v162_v6  ;;  %171 = vst [vmem:[%s1147_s9 + $0x30] sm:$0xff] (!%p772_p3), %v163_v7  ;;  %v1174_v11 = vld [vmem:[%s1138_s18 + $0x10] sm:$0x3] (!%p772_p3)  ;;  %v1177_v12 = vld [vmem:[%s1138_s18 + $0x18] sm:$0x3] (!%p772_p3) }
  0x4e   : > { %172 = vst [vmem:[%s1147_s9 + $0x38] sm:$0xff] (!%p772_p3), %v164_v8  ;;  %v1180_v13 = vld [vmem:[%s1138_s18] sm:$0xc] (!%p772_p3)  ;;  %v1183_v14 = vld [vmem:[%s1138_s18 + $0x8] sm:$0xc] (!%p772_p3) }
  0x4f   : > { %v1186_v15 = vld [vmem:[%s1138_s18 + $0x20] sm:$0x3] (!%p772_p3)  ;;  %v1189_v16 = vld [vmem:[%s1138_s18 + $0x28] sm:$0x3] (!%p772_p3)  ;;  %v1192_v17 = vld [vmem:[%s1138_s18 + $0x30] sm:$0x3] (!%p772_p3) }
  0x50   : > { %v1195_v18 = vld [vmem:[%s1138_s18 + $0x38] sm:$0x3] (!%p772_p3)  ;;  %v1198_v19 = vld [vmem:[%s1138_s18 + $0x10] sm:$0xc] (!%p772_p3)  ;;  %v1201_v20 = vld [vmem:[%s1138_s18 + $0x18] sm:$0xc] (!%p772_p3) }
  0x51   : > { %v1204_v21 = vld [vmem:[%s1138_s18 + $0x20] sm:$0xc]  ;;  %v1207_v22 = vld [vmem:[%s1138_s18 + $0x28] sm:$0xc]  ;;  %v1210_v23 = vld [vmem:[%s1138_s18 + $0x30] sm:$0xc] }
  0x52   : > { %v1213_v24 = vld [vmem:[%s1138_s18 + $0x38] sm:$0xc]  ;;  %v197_v25 = vrot.slane %v1180_v13, 2  ;;  %v198_v26 = vrot.slane %v1183_v14, 2  ;;  %v199_v27 = vrot.slane %v1198_v19, 2  ;;  %v200_v28 = vrot.slane %v1201_v20, 2 }
  0x53   : > { %v1220_v29 = vld [vmem:[%s1138_s18] sm:$0x30]  ;;  %v201_v30 = vrot.slane %v1204_v21, 2  ;;  %v202_v31 = vrot.slane %v1207_v22, 2  ;;  %v203_v32 = vrot.slane %v1210_v23, 2  ;;  %v204_v33 = vrot.slane %v1213_v24, 2 }
  0x54   : > { %v1227_v34 = vld [vmem:[%s1138_s18 + $0x8] sm:$0x30]  ;;  %v213_v35 = vadd.f32 %v197_v25, %v1168_v9  ;;  %v214_v36 = vadd.f32 %v198_v26, %v1171_v10  ;;  %v215_v37 = vadd.f32 %v199_v27, %v1174_v11  ;;  %v216_v38 = vadd.f32 %v200_v28, %v1177_v12  ;;  %v1234_v39 = vld [vmem:[%s1138_s18 + $0x10] sm:$0x30]  ;;  %v1237_v40 = vld [vmem:[%s1138_s18 + $0x18] sm:$0x30] }
  0x55   : > { %v1240_v41 = vld [vmem:[%s1138_s18 + $0x20] sm:$0x30]  ;;  %v217_v42 = vadd.f32 %v201_v30, %v1186_v15  ;;  %v218_v43 = vadd.f32 %v202_v31, %v1189_v16  ;;  %v219_v44 = vadd.f32 %v203_v32, %v1192_v17  ;;  %v220_v45 = vadd.f32 %v204_v33, %v1195_v18  ;;  %v1247_v46 = vld [vmem:[%s1138_s18 + $0x28] sm:$0x30]  ;;  %v1250_v47 = vld [vmem:[%s1138_s18 + $0x30] sm:$0x30] }
  0x56   : > { %v1253_v48 = vld [vmem:[%s1138_s18 + $0x38] sm:$0x30]  ;;  %v237_v49 = vrot.slane %v1220_v29, 4  ;;  %v238_v50 = vrot.slane %v1227_v34, 4  ;;  %v239_v51 = vrot.slane %v1234_v39, 4  ;;  %v240_v52 = vrot.slane %v1237_v40, 4 }
  0x57   : > { %v1260_v53 = vld [vmem:[%s1138_s18] sm:$0xc0]  ;;  %v241_v54 = vrot.slane %v1240_v41, 4  ;;  %v242_v55 = vrot.slane %v1247_v46, 4  ;;  %v243_v56 = vrot.slane %v1250_v47, 4  ;;  %v244_v57 = vrot.slane %v1253_v48, 4 }
  0x58   : > { %v1267_v58 = vld [vmem:[%s1138_s18 + $0x8] sm:$0xc0]  ;;  %v253_v59 = vadd.f32 %v237_v49, %v213_v35  ;;  %v254_v60 = vadd.f32 %v238_v50, %v214_v36  ;;  %v255_v61 = vadd.f32 %v239_v51, %v215_v37  ;;  %v256_v62 = vadd.f32 %v240_v52, %v216_v38  ;;  %v1270_v63 = vld [vmem:[%s1138_s18 + $0x10] sm:$0xc0]  ;;  %v1273_v0 = vld [vmem:[%s1138_s18 + $0x18] sm:$0xc0] }
  0x59   : > { %v1276_v1 = vld [vmem:[%s1138_s18 + $0x20] sm:$0xc0]  ;;  %v257_v2 = vadd.f32 %v241_v54, %v217_v42  ;;  %v258_v3 = vadd.f32 %v242_v55, %v218_v43  ;;  %v259_v4 = vadd.f32 %v243_v56, %v219_v44  ;;  %v260_v5 = vadd.f32 %v244_v57, %v220_v45  ;;  %v1279_v6 = vld [vmem:[%s1138_s18 + $0x28] sm:$0xc0]  ;;  %v1282_v7 = vld [vmem:[%s1138_s18 + $0x30] sm:$0xc0] }
  0x5a   : > { %v1285_v8 = vld [vmem:[%s1138_s18 + $0x38] sm:$0xc0]  ;;  %v277_v25 = vrot.slane %v1260_v53, 6  ;;  %v278_v26 = vrot.slane %v1267_v58, 6  ;;  %v279_v27 = vrot.slane %v1270_v63, 6  ;;  %v280_v28 = vrot.slane %v1273_v0, 6 }
  0x5b   : > { %v281_v30 = vrot.slane %v1276_v1, 6  ;;  %v282_v31 = vrot.slane %v1279_v6, 6  ;;  %v283_v32 = vrot.slane %v1282_v7, 6  ;;  %v284_v33 = vrot.slane %v1285_v8, 6 }
  0x5c   : > { %v293_v35 = vadd.f32 %v277_v25, %v253_v59  ;;  %v294_v36 = vadd.f32 %v278_v26, %v254_v60  ;;  %v295_v37 = vadd.f32 %v279_v27, %v255_v61  ;;  %v296_v38 = vadd.f32 %v280_v28, %v256_v62 }
  0x5d   : > { %v297_v42 = vadd.f32 %v281_v30, %v257_v2  ;;  %v298_v43 = vadd.f32 %v282_v31, %v258_v3  ;;  %v299_v44 = vadd.f32 %v283_v32, %v259_v4  ;;  %v300_v45 = vadd.f32 %v284_v33, %v260_v5 }
  0x5e   : > { %v1295_v49 = vmul.f32 0.25, %v293_v35  ;;  %v1297_v50 = vmul.f32 0.25, %v294_v36  ;;  %v1299_v51 = vmul.f32 0.25, %v295_v37  ;;  %v1301_v52 = vmul.f32 0.25, %v296_v38 }
  0x5f   : > { %v1303_v54 = vmul.f32 0.25, %v297_v42  ;;  %v1305_v55 = vmul.f32 0.25, %v298_v43  ;;  %v1307_v56 = vmul.f32 0.25, %v299_v44  ;;  %v1309_v57 = vmul.f32 0.25, %v300_v45 }
  0x60   : > { %v309_v59 = vsub.f32 %v1168_v9, %v1295_v49  ;;  %v310_v60 = vsub.f32 %v1171_v10, %v1297_v50  ;;  %v311_v61 = vsub.f32 %v1174_v11, %v1299_v51  ;;  %v312_v62 = vsub.f32 %v1177_v12, %v1301_v52 }
  0x61   : > { %v313_v2 = vsub.f32 %v1186_v15, %v1303_v54  ;;  %v314_v3 = vsub.f32 %v1189_v16, %v1305_v55  ;;  %v315_v4 = vsub.f32 %v1192_v17, %v1307_v56  ;;  %v316_v9 = vsub.f32 %v1195_v18, %v1309_v57 }
  0x62   : > { %v317_v5 = vmul.f32 %v309_v59, %v309_v59  ;;  %v318_v10 = vmul.f32 %v310_v60, %v310_v60  ;;  %v319_v25 = vmul.f32 %v311_v61, %v311_v61  ;;  %v320_v26 = vmul.f32 %v312_v62, %v312_v62 }
  0x63   : > { %v321_v11 = vmul.f32 %v313_v2, %v313_v2  ;;  %v322_v27 = vmul.f32 %v314_v3, %v314_v3  ;;  %v323_v28 = vmul.f32 %v315_v4, %v315_v4  ;;  %v324_v12 = vmul.f32 %v316_v9, %v316_v9 }
  0x64   : > { %v341_v30 = vrot.slane %v1295_v49, 6  ;;  %v342_v15 = vrot.slane %v1297_v50, 6  ;;  %v343_v16 = vrot.slane %v1299_v51, 6  ;;  %v344_v31 = vrot.slane %v1301_v52, 6 }
  0x65   : > { %v345_v17 = vrot.slane %v1303_v54, 6  ;;  %v346_v18 = vrot.slane %v1305_v55, 6  ;;  %v347_v32 = vrot.slane %v1307_v56, 6  ;;  %v348_v33 = vrot.slane %v1309_v57, 6 }
  0x66   : > { %v357_v35 = vsub.f32 %v1180_v13, %v341_v30  ;;  %v358_v36 = vsub.f32 %v1183_v14, %v342_v15  ;;  %v359_v37 = vsub.f32 %v1198_v19, %v343_v16  ;;  %v360_v38 = vsub.f32 %v1201_v20, %v344_v31 }
  0x67   : > { %v361_v42 = vsub.f32 %v1204_v21, %v345_v17  ;;  %v362_v43 = vsub.f32 %v1207_v22, %v346_v18  ;;  %v363_v44 = vsub.f32 %v1210_v23, %v347_v32  ;;  %v364_v45 = vsub.f32 %v1213_v24, %v348_v33 }
  0x68   : > { %v365_v59 = vmul.f32 %v357_v35, %v357_v35  ;;  %v366_v60 = vmul.f32 %v358_v36, %v358_v36  ;;  %v367_v61 = vmul.f32 %v359_v37, %v359_v37  ;;  %v368_v62 = vmul.f32 %v360_v38, %v360_v38 }
  0x69   : > { %v369_v2 = vmul.f32 %v361_v42, %v361_v42  ;;  %v370_v13 = vmul.f32 %v362_v43, %v362_v43  ;;  %v371_v3 = vmul.f32 %v363_v44, %v363_v44  ;;  %v372_v14 = vmul.f32 %v364_v45, %v364_v45 }
  0x6a   : > { %v381_v4 = vrot.slane %v365_v59, 2  ;;  %v382_v19 = vrot.slane %v366_v60, 2  ;;  %v383_v9 = vrot.slane %v367_v61, 2  ;;  %v384_v20 = vrot.slane %v368_v62, 2 }
  0x6b   : > { %v385_v30 = vrot.slane %v369_v2, 2  ;;  %v386_v21 = vrot.slane %v370_v13, 2  ;;  %v387_v15 = vrot.slane %v371_v3, 2  ;;  %v388_v22 = vrot.slane %v372_v14, 2 }
  0x6c   : > { %v397_v16 = vadd.f32 %v381_v4, %v317_v5  ;;  %v398_v23 = vadd.f32 %v382_v19, %v318_v10  ;;  %v399_v31 = vadd.f32 %v383_v9, %v319_v25  ;;  %v400_v24 = vadd.f32 %v384_v20, %v320_v26 }
  0x6d   : > { %v401_v17 = vadd.f32 %v385_v30, %v321_v11  ;;  %v402_v18 = vadd.f32 %v386_v21, %v322_v27  ;;  %v403_v32 = vadd.f32 %v387_v15, %v323_v28  ;;  %v404_v33 = vadd.f32 %v388_v22, %v324_v12 }
  0x6e   : > { %v405_v35 = vrot.slane %v1295_v49, 4  ;;  %v406_v36 = vrot.slane %v1297_v50, 4  ;;  %v407_v37 = vrot.slane %v1299_v51, 4  ;;  %v408_v38 = vrot.slane %v1301_v52, 4 }
  0x6f   : > { %v409_v42 = vrot.slane %v1303_v54, 4  ;;  %v410_v43 = vrot.slane %v1305_v55, 4  ;;  %v411_v5 = vrot.slane %v1307_v56, 4  ;;  %v412_v10 = vrot.slane %v1309_v57, 4 }
  0x70   : > { %v421_v25 = vsub.f32 %v1220_v29, %v405_v35  ;;  %v422_v26 = vsub.f32 %v1227_v34, %v406_v36  ;;  %v423_v11 = vsub.f32 %v1234_v39, %v407_v37  ;;  %v424_v27 = vsub.f32 %v1237_v40, %v408_v38 }
  0x71   : > { %v425_v28 = vsub.f32 %v1240_v41, %v409_v42  ;;  %v426_v12 = vsub.f32 %v1247_v46, %v410_v43  ;;  %v427_v44 = vsub.f32 %v1250_v47, %v411_v5  ;;  %v428_v45 = vsub.f32 %v1253_v48, %v412_v10 }
  0x72   : > { %v429_v59 = vmul.f32 %v421_v25, %v421_v25  ;;  %v430_v60 = vmul.f32 %v422_v26, %v422_v26  ;;  %v431_v61 = vmul.f32 %v423_v11, %v423_v11  ;;  %v432_v62 = vmul.f32 %v424_v27, %v424_v27 }
  0x73   : > { %v433_v2 = vmul.f32 %v425_v28, %v425_v28  ;;  %v434_v29 = vmul.f32 %v426_v12, %v426_v12  ;;  %v435_v13 = vmul.f32 %v427_v44, %v427_v44  ;;  %v436_v34 = vmul.f32 %v428_v45, %v428_v45 }
  0x74   : > { %v445_v3 = vrot.slane %v429_v59, 4  ;;  %v446_v39 = vrot.slane %v430_v60, 4  ;;  %v447_v14 = vrot.slane %v431_v61, 4  ;;  %v448_v40 = vrot.slane %v432_v62, 4 }
  0x75   : > { %v449_v4 = vrot.slane %v433_v2, 4  ;;  %v450_v41 = vrot.slane %v434_v29, 4  ;;  %v451_v19 = vrot.slane %v435_v13, 4  ;;  %v452_v46 = vrot.slane %v436_v34, 4 }
  0x76   : > { %v461_v9 = vadd.f32 %v445_v3, %v397_v16  ;;  %v462_v47 = vadd.f32 %v446_v39, %v398_v23  ;;  %v463_v20 = vadd.f32 %v447_v14, %v399_v31  ;;  %v464_v48 = vadd.f32 %v448_v40, %v400_v24 }
  0x77   : > { %v465_v30 = vadd.f32 %v449_v4, %v401_v17  ;;  %v466_v21 = vadd.f32 %v450_v41, %v402_v18  ;;  %v467_v15 = vadd.f32 %v451_v19, %v403_v32  ;;  %v468_v22 = vadd.f32 %v452_v46, %v404_v33 }
  0x78   : > { %v469_v35 = vrot.slane %v1295_v49, 2  ;;  %v470_v36 = vrot.slane %v1297_v50, 2  ;;  %v471_v37 = vrot.slane %v1299_v51, 2  ;;  %v472_v38 = vrot.slane %v1301_v52, 2 }
  0x79   : > { %v473_v42 = vrot.slane %v1303_v54, 2  ;;  %v474_v43 = vrot.slane %v1305_v55, 2  ;;  %v475_v16 = vrot.slane %v1307_v56, 2  ;;  %v476_v23 = vrot.slane %v1309_v57, 2 }
  0x7a   : > { %v485_v31 = vsub.f32 %v1260_v53, %v469_v35  ;;  %v486_v24 = vsub.f32 %v1267_v58, %v470_v36  ;;  %v487_v49 = vsub.f32 %v1270_v63, %v471_v37  ;;  %v488_v50 = vsub.f32 %v1273_v0, %v472_v38 }
  0x7b   : > { %v489_v51 = vsub.f32 %v1276_v1, %v473_v42  ;;  %v490_v52 = vsub.f32 %v1279_v6, %v474_v43  ;;  %v491_v54 = vsub.f32 %v1282_v7, %v475_v16  ;;  %v492_v55 = vsub.f32 %v1285_v8, %v476_v23 }
  0x7c   : > { %v493_v17 = vmul.f32 %v485_v31, %v485_v31  ;;  %v494_v56 = vmul.f32 %v486_v24, %v486_v24  ;;  %v495_v18 = vmul.f32 %v487_v49, %v487_v49  ;;  %v496_v57 = vmul.f32 %v488_v50, %v488_v50 }
  0x7d   : > { %v497_v32 = vmul.f32 %v489_v51, %v489_v51  ;;  %v498_v53 = vmul.f32 %v490_v52, %v490_v52  ;;  %v499_v33 = vmul.f32 %v491_v54, %v491_v54  ;;  %v500_v58 = vmul.f32 %v492_v55, %v492_v55 }
  0x7e   : > { %v509_v5 = vrot.slane %v493_v17, 6  ;;  %v510_v63 = vrot.slane %v494_v56, 6  ;;  %v511_v10 = vrot.slane %v495_v18, 6  ;;  %v512_v0 = vrot.slane %v496_v57, 6 }
  0x7f   : > { %v513_v25 = vrot.slane %v497_v32, 6  ;;  %v514_v1 = vrot.slane %v498_v53, 6  ;;  %v515_v26 = vrot.slane %v499_v33, 6  ;;  %v516_v6 = vrot.slane %v500_v58, 6 }
  0x80   : > { %v525_v11 = vadd.f32 %v509_v5, %v461_v9  ;;  %v526_v7 = vadd.f32 %v510_v63, %v462_v47  ;;  %v527_v27 = vadd.f32 %v511_v10, %v463_v20  ;;  %v528_v8 = vadd.f32 %v512_v0, %v464_v48 }
  0x81   : > { %v529_v28 = vadd.f32 %v513_v25, %v465_v30  ;;  %v530_v12 = vadd.f32 %v514_v1, %v466_v21  ;;  %v531_v44 = vadd.f32 %v515_v26, %v467_v15  ;;  %v532_v45 = vadd.f32 %v516_v6, %v468_v22 }
  0x82   : > { %v533_v59 = vmul.f32 0.25, %v525_v11  ;;  %v534_v60 = vmul.f32 0.25, %v526_v7  ;;  %v535_v61 = vmul.f32 0.25, %v527_v27  ;;  %v536_v62 = vmul.f32 0.25, %v528_v8 }
  0x83   : > { %v537_v2 = vmul.f32 0.25, %v529_v28  ;;  %v538_v29 = vmul.f32 0.25, %v530_v12  ;;  %v539_v13 = vmul.f32 0.25, %v531_v44  ;;  %v540_v14 = vmul.f32 0.25, %v532_v45 }
  0x84   : > { %v541_v34 = vadd.f32 1e-08, %v533_v59  ;;  %v542_v3 = vadd.f32 1e-08, %v534_v60  ;;  %v543_v39 = vadd.f32 1e-08, %v535_v61 }
  0x85   : > { %v544_v40 = vadd.f32 1e-08, %v536_v62  ;;  %v1375_v4 = vadd.f32 1e-08, %v537_v2  ;;  %v1377_v41 = vadd.f32 1e-08, %v538_v29 }
  0x86   : > { %859 = vrsqrt.f32 %v541_v34  ;;  %v1379_v19 = vadd.f32 1e-08, %v539_v13  ;;  %v1381_v46 = vadd.f32 1e-08, %v540_v14  ;;  %vm551_vm1 = vcmp.eq.f32.partialorder %v541_v34, inf }
  0x87   : > { %861 = vrsqrt.f32 %v542_v3  ;;  %vm553_vm2 = vcmp.eq.f32.partialorder %v541_v34, 0.0  ;;  %v554_v9 = vand.u32 2147483648, %v541_v34  ;;  %vm558_vm4 = vcmp.eq.f32.partialorder %v542_v3, inf }
  0x88   : > { %863 = vrsqrt.f32 %v543_v39  ;;  %vm560_vm5 = vcmp.eq.f32.partialorder %v542_v3, 0.0  ;;  %v561_v47 = vand.u32 2147483648, %v542_v3  ;;  %vm565_vm6 = vcmp.eq.f32.partialorder %v543_v39, inf }
  0x89   : > { %865 = vrsqrt.f32 %v544_v40  ;;  %vm567_vm7 = vcmp.eq.f32.partialorder %v543_v39, 0.0  ;;  %v568_v20 = vand.u32 2147483648, %v543_v39  ;;  %vm572_vm8 = vcmp.eq.f32.partialorder %v544_v40, inf }
  0x8a   : > { %867 = vrsqrt.f32 %v1375_v4  ;;  %vm574_vm9 = vcmp.eq.f32.partialorder %v544_v40, 0.0  ;;  %v575_v30 = vand.u32 2147483648, %v544_v40  ;;  %vm579_vm10 = vcmp.eq.f32.partialorder %v1375_v4, inf }
  0x8b   : > { %869 = vrsqrt.f32 %v1377_v41  ;;  %vm581_vm11 = vcmp.eq.f32.partialorder %v1375_v4, 0.0  ;;  %v582_v22 = vand.u32 2147483648, %v1375_v4  ;;  %vm586_vm12 = vcmp.eq.f32.partialorder %v1377_v41, inf }
  0x8c   : > { %871 = vrsqrt.f32 %v1379_v19  ;;  %vm588_vm13 = vcmp.eq.f32.partialorder %v1377_v41, 0.0  ;;  %v589_v37 = vand.u32 2147483648, %v1377_v41  ;;  %vm593_vm14 = vcmp.eq.f32.partialorder %v1379_v19, inf }
  0x8d   : > { %873 = vrsqrt.f32 %v1381_v46  ;;  %vm595_vm15 = vcmp.eq.f32.partialorder %v1379_v19, 0.0  ;;  %v596_v16 = vand.u32 2147483648, %v1379_v19  ;;  %vm600_vm0 = vcmp.eq.f32.partialorder %v1381_v46, inf }
  0x8e   : > { %v603_v50 = vand.u32 2147483648, %v1381_v46 }
  0x90   : > { %v860_v48 = vpop.eup %859 }
  0x91   : > { %v862_v21 = vpop.eup %861  ;;  %v550_v15 = vmul.f32 %v860_v48, %v541_v34 }
  0x92   : > { %v864_v35 = vpop.eup %863  ;;  %v557_v36 = vmul.f32 %v862_v21, %v542_v3 }
  0x93   : > { %v866_v38 = vpop.eup %865  ;;  %v552_v42 = vsel %vm551_vm1, %v541_v34, %v550_v15  ;;  %v564_v43 = vmul.f32 %v864_v35, %v543_v39  ;;  %vm602_vm1 = vcmp.eq.f32.partialorder %v1381_v46, 0.0  ;;  %v623_v34 = vld [vmem:[#allocation2] sm:$0x3] }
  0x94   : > { %v868_v23 = vpop.eup %867  ;;  %v555_v31 = vsel %vm553_vm2, %v554_v9, %v552_v42  ;;  %v559_v24 = vsel %vm558_vm4, %v542_v3, %v557_v36  ;;  %v571_v49 = vmul.f32 %v866_v38, %v544_v40  ;;  %vm625_vm2 = vcmask 1024  }
  0x95   : > { %v870_v51 = vpop.eup %869  ;;  %v562_v52 = vsel %vm560_vm5, %v561_v47, %v559_v24  ;;  %v566_v54 = vsel %vm565_vm6, %v543_v39, %v564_v43  ;;  %v578_v55 = vmul.f32 %v868_v23, %v1375_v4  ;;  %v606_v17 = vsel %vm605_vm3, %v555_v31, 0.0 }
  0x96   : > { %v872_v56 = vpop.eup %871  ;;  %v569_v18 = vsel %vm567_vm7, %v568_v20, %v566_v54  ;;  %v573_v57 = vsel %vm572_vm8, %v544_v40, %v571_v49  ;;  %v585_v32 = vmul.f32 %v870_v51, %v1377_v41  ;;  %v607_v53 = vsel %vm605_vm3, %v562_v52, 0.0 }
  0x97   : > { %v874_v33 = vpop.eup %873  ;;  %v576_v58 = vsel %vm574_vm9, %v575_v30, %v573_v57  ;;  %v580_v5 = vsel %vm579_vm10, %v1375_v4, %v578_v55  ;;  %v592_v63 = vmul.f32 %v872_v56, %v1379_v19  ;;  %v608_v10 = vadd.f32 %v607_v53, %v606_v17 }
  0x98   : > { %v583_v0 = vsel %vm581_vm11, %v582_v22, %v580_v5  ;;  %v587_v25 = vsel %vm586_vm12, %v1377_v41, %v585_v32  ;;  %v599_v1 = vmul.f32 %v874_v33, %v1381_v46  ;;  %v609_v26 = vsel %vm605_vm3, %v569_v18, 0.0 }
  0x99   : > { %v590_v6 = vsel %vm588_vm13, %v589_v37, %v587_v25  ;;  %v594_v11 = vsel %vm593_vm14, %v1379_v19, %v592_v63  ;;  %v610_v7 = vadd.f32 %v609_v26, %v608_v10  ;;  %v611_v27 = vsel %vm605_vm3, %v576_v58, 0.0 }
  0x9a   : > { %v601_v8 = vsel %vm600_vm0, %v1381_v46, %v599_v1  ;;  %v613_v28 = vsel %vm605_vm3, %v583_v0, 0.0  ;;  %v597_v12 = vsel %vm595_vm15, %v596_v16, %v594_v11  ;;  %v615_v45 = vsel %vm605_vm3, %v590_v6, 0.0 }
  0x9b   : > { %v612_v44 = vadd.f32 %v611_v27, %v610_v7  ;;  %v604_v59 = vsel %vm602_vm1, %v603_v50, %v601_v8  ;;  %v617_v61 = vsel %vm605_vm3, %v597_v12, 0.0 }
  0x9c   : > { %v619_v2 = vsel %vm605_vm3, %v604_v59, 0.0 }
  0x9d   : > { %v614_v60 = vadd.f32 %v613_v28, %v612_v44 }
  0x9f   : > { %v616_v62 = vadd.f32 %v615_v45, %v614_v60 }
  0xa1   : > { %v618_v29 = vadd.f32 %v617_v61, %v616_v62 }
  0xa3   : > { %v620_v13 = vadd.f32 %v619_v2, %v618_v29 }
  0xa5   : > { %621 = vadd.xlane.f32.xlu0 %v620_v13 }
 0x132   : > { %v622_v3 = vpop.xlane.xlu0 %621 }
 0x133   : > { %v624_v39 = vadd.f32 %v623_v34, %v622_v3 }
 0x135   : > { %626 = vst.msk [vmem:[#allocation2] sm:$0x3] %vm625_vm2, %v624_v39 }
 0x136 PF: > { %p773_p8 = scmp.lt.s32.totalorder %s1044_s13, 1 }
 0x137   : > { %v632_v41 = vlaneseq (!%p773_p8) }
 0x138   : > { %630 = sbr.rel (%p773_p8) target bundleno = 377 (0x179), region = 40 }
 0x139   : > { %v633_v19 = vshrl.u32 (!%p773_p8), %v632_v41, 7 }
 0x13b   : > { %vm634_vm3 = vcmp.eq.s32.totalorder (!%p773_p8), %v633_v19, 0  ;;  %vm635_vm4 = vcmp.eq.s32.totalorder (!%p773_p8), %v633_v19, 2  ;;  %vm641_vm5 = vcmp.eq.s32.totalorder (!%p773_p8), %v633_v19, 1  ;;  %vm642_vm6 = vcmp.eq.s32.totalorder (!%p773_p8), %v633_v19, 3 }
 0x13c   : > { %v631_v14 = vld [vmem:[#allocation2] sm:$0x3] (!%p773_p8)  ;;  %vm636_vm7 = vmor (!%p773_p8), %vm634_vm3, %vm635_vm4  ;;  %vm637_vm8 = vcmp.eq.s32.totalorder (!%p773_p8), %v633_v19, 4  ;;  %vm644_vm10 = vcmp.eq.s32.totalorder (!%p773_p8), %v633_v19, 5  ;;  %vm639_vm12 = vcmp.eq.s32.totalorder (!%p773_p8), %v633_v19, 6  ;;  %vm646_vm14 = vcmp.eq.s32.totalorder (!%p773_p8), %v633_v19, 7 }
 0x13d   : > { %v648_v40 = vmul.f32 (!%p773_p8), 0.0009765625, %v631_v14  ;;  %vm643_vm9 = vmor (!%p773_p8), %vm641_vm5, %vm642_vm6 }
 0x13e   : > { %vm638_vm11 = vmor (!%p773_p8), %vm636_vm7, %vm637_vm8 }
 0x13f   : > { %785 = vpush %v648_v40  ;;  %v658_v4 = vrot.slane %v648_v40, 1  ;;  %vm645_vm13 = vmor %vm643_vm9, %vm644_vm10 }
 0x140   : > { %vm640_vm15 = vmor %vm638_vm11, %vm639_vm12 }
 0x141   : > { %787 = vpush %v658_v4  ;;  %vm647_vm0 = vmor %vm645_vm13, %vm646_vm14 }
 0x170   : > { %s786_s23 = spop %785 }
 0x171   : > { %v653_v46 = vstv %s786_s23 }
 0x172   : > { %v655_v9 = vsel %vm640_vm15, %v653_v46, 0.0  ;;  %s788_s16 = spop %787 }
 0x173   : > { %v660_v47 = vstv %s788_s16 }
 0x174   : > { %v662_v20 = vsel %vm647_vm0, %v660_v47, %v655_v9 }
 0x175   : > { %663 = vst [vmem:[%s1147_s9] sm:$0xff] %v662_v20  ;;  %664 = vst [vmem:[%s1147_s9 + $0x8] sm:$0xff] %v662_v20 }
 0x176   : > { %665 = vst [vmem:[%s1147_s9 + $0x10] sm:$0xff] %v662_v20  ;;  %666 = vst [vmem:[%s1147_s9 + $0x18] sm:$0xff] %v662_v20 }
 0x177   : > { %667 = vst [vmem:[%s1147_s9 + $0x20] sm:$0xff] %v662_v20  ;;  %668 = vst [vmem:[%s1147_s9 + $0x28] sm:$0xff] %v662_v20 }
 0x178   : > { %669 = vst [vmem:[%s1147_s9 + $0x30] sm:$0xff] %v662_v20  ;;  %670 = vst [vmem:[%s1147_s9 + $0x38] sm:$0xff] %v662_v20 }
 0x179 PF: > { %s1448_s19 = scalar_lea.sflag [#allocation5], %s136_s14  ;;  %p1522_p4 = scmp.ne.s32.totalorder %s1517_s26, 0 }
 0x17a   : > { %s775_s20 = sshll.u32 (%p1522_p4), %s1044_s13, 3 }
 0x17b   : > { %678 = sbr.rel (!%p1522_p4) target bundleno = 413 (0x19d), region = 44  ;;  %s680_s21 = ssub.s32 (%p1522_p4), 10, %s775_s20 }
 0x17c   : > { %p681_p12 = scmp.lt.s32.totalorder (%p1522_p4), %s680_s21, 8 }
 0x182   : > { %s1533_s21 = smov (!%p681_p12, %s680_s21), 8 }
 0x183   : > { %s1453_s24 = sshll.u32 %s1533_s21, 7 }
 0x184   : > { %s685_s28 = ssub.s32 1024, %s1453_s24 }
 0x185   : > { %686 = vsyncadd %s1448_s19, %s685_s28  ;;  %p777_p2 = scmp.ne.s32.totalorder %s1453_s24, 0  ;;  %s784_s29 = sshll.u32 %s1044_s13, 10 }
 0x186   : > { %s1462_s2 = scalar_lea.hbm %s1514_s1, %s784_s29  ;;  %s692_s3 = sshll.u32 %s1147_s9, 4  ;;  %s693_s3 = int_to_ptr.vmem [resolvable:$true] %s692_s3 }
 0x187   : > { %s905_s5 = scalar_lea.vmem %s693_s3, %s1453_s24  ;;  %s999_s17 = smov [#allocation6]  }
 0x188   : > { %p906_p9 = scmp.ne.s32.totalorder %s693_s3, %s905_s5  ;;  %s909_s18 = sshll.u32 %s999_s17, 4  ;;  %s910_s18 = int_to_ptr.vmem [resolvable:$false] %s909_s18 }
 0x189   : > { %s911_s14 = scalar_lea.vmem %s910_s18, 2048  ;;  %p912_p13 = scmp.lt.s32.totalorder %s693_s3, %s910_s18 }
 0x18a   : > { %p907_p11 = pnand %p906_p9, %p777_p2  ;;  %p913_p0 = scmp.lt.s32.totalorder %s911_s14, %s905_s5 }
 0x18c   : > { %p908_p6 = pneg %p907_p11  ;;  %p914_p5 = por %p913_p0, %p912_p13 }
 0x18e   : > { %p915_p7 = pnand %p914_p5, %p908_p6 }
 0x190   : > { %918 = shalt.err (!%p915_p7)
}
 0x191   : > { %s919_s13 = scalar_lea.hbm %s1462_s2, %s1453_s24  ;;  %s923_s23 = scalar_lea.hbm %s1514_s1, 1280 }
 0x192   : > { %p920_p10 = scmp.ne.s32.totalorder %s1462_s2, %s919_s13  ;;  %p924_p8 = scmp.lt.u32.totalorder %s1462_s2, %s1514_s1 }
 0x193   : > { %p925_p4 = scmp.lt.u32.totalorder %s923_s23, %s919_s13  ;;  %p927_p9 = scmp.lt.u32.totalorder %s919_s13, %s1462_s2 }
 0x194   : > { %p921_p1 = pnand %p920_p10, %p777_p2 }
 0x195   : > { %p926_p12 = por %p925_p4, %p924_p8 }
 0x196   : > { %p922_p3 = pneg %p921_p1 }
 0x197   : > { %p928_p11 = por %p927_p9, %p926_p12 }
 0x199   : > { %p929_p6 = pnand %p928_p11, %p922_p3 }
 0x19b   : > { %932 = shalt.err (!%p929_p6)
}
 0x19c   : > { %695 = dma.vmem_to_hbm [thread:$0]  (%p777_p2), %s693_s3, %s1453_s24, %s1462_s2, %s1448_s19  }
 0x19d PF: > { %s704_s21 = sand.u32 1, %s971_s6   ;;  %p1523_p13 = scmp.ne.s32.totalorder %s1518_s27, 0 }
 0x19e   : > { %p1524_p0 = scmp.ge.s32.totalorder %s995_s12, 2  ;;  %s705_s28 = scalar_lea.sflag [#allocation5], %s704_s21 }
 0x1a0   : > { %p797_p5 = pnand %p1524_p0, %p1523_p13 }
 0x1a2   : > { %966 = dma.done.wait (!%p797_p5), %s705_s28, 1024  }
 0x1a3   : > { %968 = vsyncadd (!%p797_p5), %s705_s28, 4294966272  ;;  %p14_p2 = scmp.ge.s32.totalorder %s1048_s15, 4   ;;  %s1525_s6 = smov %s975_s7 }
 0x1a4   : > { %s1526_s7 = smov %s979_s8  ;;  %s1527_s8 = smov %s1077_s25 }
 0x1a5   : > { %s1528_s9 = smov %s987_s10  ;;  %s1529_s10 = smov %s991_s11 }
 0x1a6   : > { %s1530_s11 = smov %s1067_s22  ;;  %s1531_s12 = smov %s1048_s15 }
 0x1a7   :  { %16 = sbr.rel (!%p14_p2) target bundleno = 7 (0x7), region = 81 }
 0x1ae   :  { %710 = vsyncpa [#allocation4], 1 }
 0x1af   :  { %712 = vsyncpa [#allocation4 + $0x1], 1 }
 0x1b0   :  { %713 = vsyncpa [#allocation5], 1 }
 0x1b1   :  { %715 = vsyncpa [#allocation5 + $0x1], 1 }

</bundles_post_ra>
